<compile_context>
chip_gen: v5e
topology: v5e:2x2
jax: 0.10.0
libtpu: 0.0.40
codegen_flags: <defaults>
</compile_context>

<pallas_src>
import functools

import jax
import jax.numpy as jnp
from jax.experimental import pallas as pl
from jax.experimental.pallas import tpu as pltpu

LANE = 128


def _round_up(x, m):
    return ((x + m - 1) // m) * m


def _vmem_capacity_bytes():
    """Physical VMEM per TensorCore; conservative default if unqueryable."""
    try:
        cap = getattr(pltpu.get_tpu_info(), "vmem_capacity_bytes", None)
        if cap:
            return int(cap)
    except Exception:
        pass
    return 64 * 1024 * 1024  # v7x-sized fallback; safe on every generation


def _up_pool_kernel(x_ref, w_ref, b_ref, o_ref):
    # x_ref : (tm, H)   row tile of the flattened input
    # w_ref : (H, tn)   (tile of the) transposed weight, resident across rows
    # b_ref : (1, tn)   bias tile
    # o_ref : (tm, tn)  output tile
    acc = jnp.dot(x_ref[...], w_ref[...], preferred_element_type=jnp.float32)
    o_ref[...] = (acc + b_ref[...].astype(jnp.float32)).astype(o_ref.dtype)


@functools.partial(jax.jit, static_argnames=("H", "q", "p", "tm", "tn"))
def up_pool(x, w_t, b, *, H, q, p, tm=None, tn=None):
    """SaShiMi UpPool forward.

    x: (B, L, H); w_t = weight.T: (H, p*H//q); b: (p*H//q,).
    Returns (B, L*p, H//q).  Pass bf16 operands to halve HBM traffic; MXU
    accumulation stays f32 regardless.
    """
    B, L, H_in = x.shape
    assert H_in == H
    d_out = w_t.shape[1]
    assert d_out == (p * H) // q and b.shape == (d_out,)

    M = B * L
    x_item = jnp.dtype(x.dtype).itemsize
    w_item = jnp.dtype(w_t.dtype).itemsize
    b_item = jnp.dtype(b.dtype).itemsize
    out_item = x_item                       # output matches activation dtype
    sub = 16 if x.dtype == jnp.bfloat16 else 8

    cap = _vmem_capacity_bytes()
    budget = (cap * 3) // 4                 # ~48 MiB on v7x, ~96 MiB on v5e/v6e
    vmem_limit = min((cap * 7) // 8, 112 * 1024 * 1024)

    # ---- row (M) tile: large, sublane-aligned, >= 2 tiles so v7x's two ----
    # ---- TensorCores can both be fed via the "parallel" grid axis.      ----
    tm_req = tm if tm is not None else (1024 if cap >= (96 << 20) else 512)
    tm_eff = min(tm_req, _round_up(M, sub))
    if M > sub:
        tm_eff = min(tm_eff, _round_up(pl.cdiv(M, 2), sub))
    tm_eff = max(sub, _round_up(tm_eff, sub))

    # Conservative double-buffered VMEM footprint, per-operand itemsizes.
    def _fits(t_m, t_n):
        return (2 * t_m * H * x_item            # x tiles
                + 2 * H * t_n * w_item          # weight tile(s)
                + 2 * t_n * b_item              # bias
                + 2 * t_m * t_n * out_item      # output tiles
                ) <= budget

    # ---- column (d_out) tile: keep the whole weight resident if possible; --
    # ---- tile N (multiples of 128) BEFORE ever shrinking the MXU row tile. -
    if tn is not None and tn < d_out:
        tn_eff = min(_round_up(tn, LANE), d_out)
    else:
        tn_eff = d_out
        while tn_eff > LANE and not _fits(tm_eff, tn_eff):
            tn_eff = _round_up(tn_eff // 2, LANE)
    while tm_eff > sub and not _fits(tm_eff, tn_eff):
        tm_eff = max(sub, _round_up(tm_eff // 2, sub))
    # TODO(synk): for extremely large H (where a single (tm,H)+(H,tn) pair no
    # longer fits), add a K grid axis with an f32 VMEM accumulator and
    # pl.when init/finalize; not needed for realistic SaShiMi widths.

    Mt = pl.cdiv(M, tm_eff)
    Nt = pl.cdiv(d_out, tn_eff)

    x2 = x.reshape(M, H)          # metadata-only
    b2 = b.reshape(1, d_out)      # tiny

    cost = pl.CostEstimate(
        flops=2 * M * H * d_out,
        transcendentals=0,
        bytes_accessed=(M * H * x_item + H * d_out * w_item
                        + d_out * b_item + M * d_out * out_item),
    )

    if Nt == 1:
        # Fast path: full weight + bias resident (constant index_map -> one DMA).
        grid_spec = pltpu.PrefetchScalarGridSpec(
            num_scalar_prefetch=0,
            grid=(Mt,),
            in_specs=[
                pl.BlockSpec((tm_eff, H), lambda i: (i, 0)),     # x row tile
                pl.BlockSpec((H, d_out), lambda i: (0, 0)),      # full weight
                pl.BlockSpec((1, d_out), lambda i: (0, 0)),      # bias
            ],
            out_specs=pl.BlockSpec((tm_eff, d_out), lambda i: (i, 0)),
        )
        dims = ("parallel",)
    else:
        # Big-weight path: N outer (each weight column tile DMA'd exactly once),
        # M inner.  Nt is small, so the x re-read factor is bounded.
        grid_spec = pltpu.PrefetchScalarGridSpec(
            num_scalar_prefetch=0,
            grid=(Nt, Mt),
            in_specs=[
                pl.BlockSpec((tm_eff, H), lambda j, i: (i, 0)),   # x row tile
                pl.BlockSpec((H, tn_eff), lambda j, i: (0, j)),   # weight cols
                pl.BlockSpec((1, tn_eff), lambda j, i: (0, j)),   # bias cols
            ],
            out_specs=pl.BlockSpec((tm_eff, tn_eff), lambda j, i: (i, j)),
        )
        dims = ("parallel", "parallel")

    y = pl.pallas_call(
        _up_pool_kernel,
        out_shape=jax.ShapeDtypeStruct((M, d_out), x.dtype),
        grid_spec=grid_spec,
        compiler_params=pltpu.CompilerParams(
            dimension_semantics=dims,
            vmem_limit_bytes=vmem_limit,
        ),
        cost_estimate=cost,
    )(x2, w_t, b2)

    # (B*L, p*H//q) -> (B, L*p, H//q): contiguous, metadata-only.
    return y.reshape(B, L * p, H // q)


if __name__ == "__main__":
    key = jax.random.PRNGKey(0)

    def make_case(k, B, L, H, q, p, dtype):
        d_out = (p * H) // q
        kx, kw, kb = jax.random.split(k, 3)
        x = jax.random.normal(kx, (B, L, H), dtype=jnp.float32)
        w = jax.random.normal(kw, (d_out, H), dtype=jnp.float32) * 0.02
        b = jax.random.normal(kb, (d_out,), dtype=jnp.float32) * 0.02
        ref = (jnp.einsum("blh,oh->blo", x, w,
                          precision=jax.lax.Precision.HIGHEST)
               + b).reshape(B, -1, H // q)
        return (x.astype(dtype), w.T.astype(dtype), b.astype(dtype)), ref

    k1, k2, k3 = jax.random.split(key, 3)

    # 1) f32, resident-weight fast path (d_out < 128 -> masked lane stores,
    #    no padding / no post-slice).
    B, L, H, q, p = 2, 8, 32, 2, 4
    (x, w_t, b), ref = make_case(k1, B, L, H, q, p, jnp.float32)
    out = jax.block_until_ready(up_pool(x, w_t, b, H=H, q=q, p=p))
    assert out.shape == (B, L * p, H // q), out.shape
    assert jnp.allclose(out, ref, atol=1e-5, rtol=1e-5), "f32 mismatch"

    # 2) f32 with forced N-tiling: exercises the 2-D (N outer, M inner) grid
    #    and the ragged last row block (M=20, tm=16) and column block
    #    (d_out=160, tn=128).
    B, L, H, q, p = 2, 10, 40, 2, 8
    (x, w_t, b), ref = make_case(k2, B, L, H, q, p, jnp.float32)
    out = jax.block_until_ready(up_pool(x, w_t, b, H=H, q=q, p=p, tn=128))
    assert out.shape == (B, L * p, H // q), out.shape
    assert jnp.allclose(out, ref, atol=1e-5, rtol=1e-5), "N-tiled mismatch"

    # 3) bf16 operands (halves HBM traffic), f32 MXU accumulation.
    B, L, H, q, p = 2, 8, 32, 2, 4
    (x, w_t, b), ref = make_case(k3, B, L, H, q, p, jnp.bfloat16)
    out = jax.block_until_ready(up_pool(x, w_t, b, H=H, q=q, p=p))
    assert out.shape == (B, L * p, H // q), out.shape
    assert jnp.allclose(out.astype(jnp.float32), ref, atol=2e-2), "bf16 mismatch"

    print("KERNEL_OK")
</pallas_src>

<mosaic_0001>
module attributes {stable_mosaic.version = 11 : i64} {
  func.func @_up_pool_kernel(%arg0: i32, %arg1: memref<8x32xf32, #tpu.memory_space<vmem>>, %arg2: memref<32x64xf32, #tpu.memory_space<vmem>>, %arg3: memref<1x64xf32, #tpu.memory_space<vmem>>, %arg4: memref<8x64xf32, #tpu.memory_space<vmem>>) attributes {dimension_semantics = [#tpu.dimension_semantics<parallel>], iteration_bounds = array<i64: 2>, scalar_prefetch = 0 : i64, scratch_operands = 0 : i64, tpu.core_type = #tpu.core_type<tc>, window_params = [{transform_indices = @transform_0, window_bounds = array<i64: 8, 32>}, {pipeline_mode = #tpu.pipeline_mode<synchronous>, transform_indices = @transform_1, window_bounds = array<i64: 32, 64>}, {pipeline_mode = #tpu.pipeline_mode<synchronous>, transform_indices = @transform_2, window_bounds = array<i64: 1, 64>}, {transform_indices = @transform_3, window_bounds = array<i64: 8, 64>}]} {
    %c0 = arith.constant 0 : index
    %c0_0 = arith.constant 0 : index
    %0 = vector.load %arg1[%c0, %c0_0] : memref<8x32xf32, #tpu.memory_space<vmem>>, vector<8x32xf32>
    %c0_1 = arith.constant 0 : index
    %c0_2 = arith.constant 0 : index
    %1 = vector.load %arg2[%c0_1, %c0_2] : memref<32x64xf32, #tpu.memory_space<vmem>>, vector<32x64xf32>
    %cst = arith.constant dense<0.000000e+00> : vector<8x64xf32>
    %2 = tpu.matmul %0, %1, %cst {dimension_numbers = #tpu.dot_dimension_numbers<[1], [0], [0], [1], [0, 0, 1, 1], [], []>} : vector<8x32xf32>, vector<32x64xf32>, vector<8x64xf32> -> vector<8x64xf32>
    %c0_3 = arith.constant 0 : index
    %c0_4 = arith.constant 0 : index
    %3 = vector.load %arg3[%c0_3, %c0_4] : memref<1x64xf32, #tpu.memory_space<vmem>>, vector<1x64xf32>
    %4 = vector.broadcast %3 : vector<1x64xf32> to vector<8x64xf32>
    %5 = arith.addf %2, %4 : vector<8x64xf32>
    %c0_5 = arith.constant 0 : index
    %c0_6 = arith.constant 0 : index
    %6 = vector.load %arg4[%c0_5, %c0_6] : memref<8x64xf32, #tpu.memory_space<vmem>>, vector<8x64xf32>
    tpu.vector_store %arg4[%c0_5, %c0_6], %5 {strides = array<i32>} : memref<8x64xf32, #tpu.memory_space<vmem>>, vector<8x64xf32>,
    return
  }
  func.func @transform_0(%arg0: i32) -> (i32, i32) {
    %c0_i32 = arith.constant 0 : i32
    %c0_i32_0 = arith.constant 0 : i32
    return %arg0, %c0_i32 : i32, i32
  }
  func.func @transform_1(%arg0: i32) -> (i32, i32) {
    %c0_i32 = arith.constant 0 : i32
    %c0_i32_0 = arith.constant 0 : i32
    %c0_i32_1 = arith.constant 0 : i32
    return %c0_i32, %c0_i32_0 : i32, i32
  }
  func.func @transform_2(%arg0: i32) -> (i32, i32) {
    %c0_i32 = arith.constant 0 : i32
    %c0_i32_0 = arith.constant 0 : i32
    %c0_i32_1 = arith.constant 0 : i32
    return %c0_i32, %c0_i32_0 : i32, i32
  }
  func.func @transform_3(%arg0: i32) -> (i32, i32) {
    %c0_i32 = arith.constant 0 : i32
    %c0_i32_0 = arith.constant 0 : i32
    return %arg0, %c0_i32 : i32, i32
  }
}

</mosaic_0001>

<bundles_post_ra>
// kernel: up_pool.1
= control target key start
LH: loop header
LB: loop body
LE: loop exit
PB: predicated region body
PF: predicated region fallthrough
CT: control target
= control target key end

     0   :  { %8 = vsyncpa [#allocation3], 0  ;;  %s610_s0 = inlined_call_operand.hbm [shape: f32[16,32], index: 0, kind: input, shape index: {}]   ;;  %s611_s1 = inlined_call_operand.hbm [shape: f32[32,64], index: 1, kind: input, shape index: {}]   ;;  %s612_s2 = inlined_call_operand.vmem [shape: f32[1,64], index: 2, kind: input, shape index: {}]   ;;  %s613_s3 = inlined_call_operand.vmem [shape: f32[16,64], index: 3, kind: output, shape index: {}]  }
   0x1   :  { %10 = vsyncpa [#allocation3 + $0x1], 0 }
   0x2   :  { %11 = vsyncpa [#allocation5], 0  ;;  %s504_s12 = smov 0   ;;  %s506_s13 = smov 0  }
   0x3   :  { %s508_s14 = smov 0   ;;  %s510_s15 = smov 0  }
   0x4 LB: > { %s127_s18 = sshll.u32 %s611_s1, 4  ;;  %s526_s19 = sadd.s32 4294967295, %s479_s15   ;;  %s479_s15 = sphi %s510_s15, %s620_s15   ;;  %s475_s14 = sphi %s508_s14, %s619_s14   ;;  %s471_s13 = sphi %s506_s13, %s618_s13   ;;  %s467_s12 = sphi %s504_s12, %s617_s12   ;;  %s128_s18 = int_to_ptr.hbm [resolvable:$true] %s127_s18 }
   0x5   : > { %p316_p0 = scmp.ge.s32.totalorder %s479_s15, 1  ;;  %p38_p1 = scmp.eq.s32.totalorder %s526_s19, 0 }
   0x6   : > { %p116_p2 = scmp.lt.s32.totalorder %s479_s15, 3  ;;  %s481_s21 = smov [#allocation4]  }
   0x7   : > { %s129_s22 = sshll.u32 %s481_s21, 4  ;;  %s482_s23 = smov 128   ;;  %s130_s22 = int_to_ptr.vmem [resolvable:$true] %s129_s22 }
   0x8   : > { %p531_p3 = pnand %p316_p0, %p116_p2  ;;  %s483_s24 = smov 8  }
   0x9   : > { %s540_s25 = sadd.s32 1, %s479_s15   ;;  %s24_s27 = sadd.s32 1, %s475_s14 }
   0xa   : > { %p334_p4 = pneg %p531_p3  ;;  %s21_s26 = ssub.s32 %s479_s15, %s540_s25 }
   0xb   : > { %p22_p6 = scmp.eq.s32.totalorder %s21_s26, 0  ;;  %p31_p7 = scmp.ne.s32.totalorder %s475_s14, %s471_s13 }
   0xc   : > { %p335_p5 = pnand %p334_p4, %p38_p1  ;;  %p32_p8 = scmp.eq.s32.totalorder %s479_s15, 0 }
   0xd   : > { %p37_p9 = scmp.ne.s32.totalorder %s471_s13, %s467_s12  ;;  %p343_p12 = scmp.lt.s32.totalorder %s479_s15, 2 }
   0xe   : > { %337 = dma.hbm_to_vmem [thread:$0]  (!%p335_p5), %s128_s18, 512, %s130_s22, [#allocation5], %s482_s23, %s482_s23, %s483_s24  }
   0xf   : > { %s550_s28 = scalar_select %p22_p6, %s475_s14, %s24_s27  }
  0x10   : > { %p33_p10 = por %p32_p8, %p31_p7  ;;  %p554_p11 = por %p38_p1, %p37_p9 }
  0x11   : > { %s146_s30 = sand.u32 1, %s475_s14   ;;  %s320_s5 = sshll.u32 %s479_s15, 3 }
  0x12   : > { %s319_s4 = sshll.u32 %s146_s30, 3  ;;  %s154_s8 = scalar_lea.hbm %s610_s0, %s320_s5 }
  0x13   : > { %s150_s9 = scalar_lea.vmem [#allocation2], %s319_s4  ;;  %s156_s11 = sshll.u32 %s154_s8, 4  ;;  %s157_s11 = int_to_ptr.hbm [resolvable:$true] %s156_s11 }
  0x14   : > { %s158_s10 = sshll.u32 %s150_s9, 4  ;;  %p564_p13 = pnand %p343_p12, %p33_p10  ;;  %s159_s10 = int_to_ptr.vmem [resolvable:$true] %s158_s10 }
  0x15   : > { %s147_s16 = scalar_lea.sflag [#allocation3], %s146_s30  ;;  %s411_s17 = sshra.s32 %s157_s11, 4  ;;  %s412_s17 = int_to_ptr.hbm [resolvable:$true] %s411_s17 }
  0x16   : > { %s413_s18 = scalar_lea.hbm %s412_s17, 8  ;;  %p415_p2 = pneg %p564_p13 }
  0x17   : > { %p414_p0 = scmp.ne.s32.totalorder %s412_s17, %s413_s18  ;;  %s418_s22 = scalar_lea.hbm %s610_s0, 16 }
  0x18   : > { %p419_p6 = scmp.lt.s32.totalorder %s412_s17, %s610_s0  ;;  %p420_p7 = scmp.lt.s32.totalorder %s418_s22, %s413_s18 }
  0x19   : > { %p416_p4 = pnand %p415_p2, %p414_p0 }
  0x1a   : > { %p421_p8 = por %p420_p7, %p419_p6 }
  0x1b   : > { %p417_p5 = pneg %p416_p4 }
  0x1d   : > { %p422_p9 = pnand %p421_p8, %p417_p5 }
  0x1f   : > { %425 = shalt.err (!%p422_p9)
}
  0x20   : > { %341 = dma.hbm_to_vmem [thread:$0]  (!%p564_p13), %s157_s11, 128, %s159_s10, %s147_s16  }
  0x21   : > { %167 = sbr.rel (%p531_p3) target bundleno = 178 (0xb2), region = 32  ;;  %s169_s26 = sand.u32 (!%p531_p3), 1, %s471_s13  }
  0x22   : > { %s322_s27 = sshll.u32 (!%p531_p3), %s169_s26, 3  ;;  %s170_s30 = scalar_lea.sflag (!%p531_p3), [#allocation3], %s169_s26 }
  0x23   : > { %s173_s4 = scalar_lea.vmem (!%p531_p3), [#allocation2], %s322_s27 }
  0x26   : > { %458 = dma.done.wait (%p554_p11), %s170_s30, 128  }
  0x27   : > { %460 = vsyncadd (%p554_p11), %s170_s30, 4294967168 }
  0x28   : > { %462 = dma.done.wait (%p38_p1), [#allocation5], 512  }
  0x29   : > { %464 = vsyncadd (%p38_p1), [#allocation5], 4294966784  ;;  %v209_v0 = vld [vmem:[#allocation4 + $0x18] sm:$0xff]  ;;  %v208_v1 = vld [vmem:[#allocation4 + $0x10] sm:$0xff]  ;;  %vm214_vm0 = vcmask 261120   ;;  %p201_p3 = scmp.lt.s32.totalorder %s526_s19, 1 }
  0x2a   : > { %230 = vmatpush.msra.mxu0 %v209_v0  ;;  %v207_v2 = vld [vmem:[#allocation4 + $0x8] sm:$0xff]  ;;  %v206_v3 = vld [vmem:[#allocation4] sm:$0xff]  ;;  %v205_v4 = vld [vmem:[%s173_s4] sm:$0xff]  ;;  %vm238_vm1 = vcmask 523264  }
  0x2b   : > { %s622_s19 = smov (!%p201_p3, %s526_s19), 1  ;;  %v380_v5 = vld [vmem:[%s612_s2] ss:$0 sm:$0xff] }
  0x2c   : > { %231 = vmatpush.msra.mxu0 %v208_v1  ;;  %s324_s20 = sshll.u32 %s622_s19, 3 }
  0x2d   : > { %s204_s8 = scalar_lea.vmem %s613_s3, %s324_s20 }
  0x2e   : > { %232 = vmatpush.msra.mxu0 %v207_v2 }
  0x30   : > { %233 = vmatpush.msra.mxu0 %v206_v3 }
  0x31   : > { %325 = vmatmul.msk.f32.vlgmr.msra.gmra.mxu0 %vm214_vm0, %v205_v4 }
  0xae   : > { %v235_v6 = vpop.f32.mrf.mxu0 }
  0xaf   : > { %v236_v7 = vadd.f32 %v380_v5, %v235_v6 }
  0xb1   : > { %239 = vst.msk [vmem:[%s204_s8] sm:$0xff] %vm238_vm1, %v236_v7 }
  0xb2 PF: > { %p14_p1 = scmp.ge.s32.totalorder %s540_s25, 4   ;;  %s617_s12 = smov %s471_s13 }
  0xb3   : > { %s618_s13 = smov %s475_s14  ;;  %s619_s14 = smov %s550_s28 }
  0xb4   : > { %s620_s15 = smov %s540_s25  ;;  %16 = sbr.rel (!%p14_p1) target bundleno = 4 (0x4), region = 76 }
  0xb9   :  { %259 = vsyncpa [#allocation3], 1 }
  0xba   :  { %261 = vsyncpa [#allocation3 + $0x1], 1 }
  0xbb   :  { %262 = vsyncpa [#allocation5], 1 }

</bundles_post_ra>
